<compile_context>
chip_gen: v6e
topology: v6e:2x2x1
jax: 0.10.0
libtpu: 0.0.40
codegen_flags: <defaults>
</compile_context>

<pallas_src>
import jax
import jax.numpy as jnp
from jax.experimental import pallas as pl
from jax.experimental.pallas import tpu as pltpu


def _mixup_kernel(alpha_ref, a_ref, b_ref, o_ref):
    a = a_ref[...]
    b = b_ref[...]
    alpha = alpha_ref[0].astype(a.dtype)     # scalar from SMEM, cast once
    # lerp form: b + alpha * (a - b)  ==  alpha*a + (1-alpha)*b
    o_ref[...] = b + alpha * (a - b)


def _mixup_xla(a, b, alpha):
    """Fused-XLA fallback for tiny or ragged (n % 128 != 0) inputs."""
    return b + alpha.astype(a.dtype) * (a - b)


def _choose_block_rows(rows, lanes, itemsize, sublane,
                       target_block_bytes=2 * 1024 * 1024):
    """Sublane-aligned block_rows targeting ~2 MiB blocks, grid >= 2 steps.

    Never returns a block larger than the ~2 MiB target (no VMEM blow-up) and
    never decays toward tiny 8-row blocks for awkward row counts: the last
    grid step may simply be a partial (masked) block.
    """
    if rows <= sublane:
        return rows                                   # full dim (legal block)
    br = (target_block_bytes // (lanes * itemsize)) // sublane * sublane
    br = max(br, sublane)
    if rows >= 2 * sublane:
        # Cap at ~rows/2 so the grid has >= 2 steps (both v7x TCs stream HBM).
        half = max(sublane, (rows // 2) // sublane * sublane)
        br = min(br, half)
    return min(br, rows)


def manifold_mixup(a, b, key, *, min_pallas_bytes=256 * 1024):
    """alpha ~ Beta(2,2); return (alpha*a + (1-alpha)*b, alpha)."""
    assert a.shape == b.shape and a.dtype == b.dtype
    orig_shape = a.shape
    n = a.size
    itemsize = jnp.dtype(a.dtype).itemsize

    # Beta(2,2) sample (matches torch.distributions.Beta(2,2).sample()).
    alpha = jax.random.beta(key, 2.0, 2.0, dtype=jnp.float32)   # 0-d scalar

    # Bypass cases where the Pallas path cannot win:
    #  * tiny tensors: launch + DMA-setup overhead dwarfs the HBM traffic;
    #  * n % 128 != 0: a lane-dense 2-D view would require a pad + trailing
    #    slice (two extra HBM passes on a pure-roofline op).
    if n * itemsize < min_pallas_bytes or n % 128 != 0:
        return _mixup_xla(a, b, alpha), alpha

    lanes = 128
    rows = n // lanes
    sublane = max(8, 32 // itemsize)          # 8 f32, 16 bf16, 32 int8/fp8
    block_rows = _choose_block_rows(rows, lanes, itemsize, sublane)
    grid = (pl.cdiv(rows, block_rows),)       # ragged last block is masked

    a2 = a.reshape(rows, lanes)               # contiguous view, no copy
    b2 = b.reshape(rows, lanes)

    block_bytes = block_rows * lanes * itemsize
    vmem_limit = min(32 << 20, 6 * block_bytes + (8 << 20))  # 3 arrays x 2 bufs

    out = pl.pallas_call(
        _mixup_kernel,
        out_shape=jax.ShapeDtypeStruct((rows, lanes), a.dtype),
        grid=grid,
        in_specs=[
            pl.BlockSpec(memory_space=pltpu.MemorySpace.SMEM),    # alpha (1,)
            pl.BlockSpec((block_rows, lanes), lambda i: (i, 0)),  # a
            pl.BlockSpec((block_rows, lanes), lambda i: (i, 0)),  # b
        ],
        out_specs=pl.BlockSpec((block_rows, lanes), lambda i: (i, 0)),
        compiler_params=pltpu.CompilerParams(
            dimension_semantics=("parallel",),   # shard rows across v7x TCs
            vmem_limit_bytes=vmem_limit,
        ),
        cost_estimate=pl.CostEstimate(
            flops=3 * n, transcendentals=0, bytes_accessed=3 * n * itemsize),
    )(alpha.reshape(1), a2, b2)

    return out.reshape(orig_shape), alpha


if __name__ == "__main__":
    key = jax.random.PRNGKey(0)
    ka, kb, kalpha = jax.random.split(key, 3)

    # NCHW inputs, small shapes (batch=2, channels=4, spatial=16)
    a = jax.random.normal(ka, (2, 4, 16, 16), dtype=jnp.float32)
    b = jax.random.normal(kb, (2, 4, 16, 16), dtype=jnp.float32)

    # Force the Pallas path (the auto-bypass would route this 8 KiB demo to
    # fused XLA); the kernel itself must be exercised here.
    m, alpha = manifold_mixup(a, b, kalpha, min_pallas_bytes=0)
    m = jax.block_until_ready(m)

    # correctness check against plain-JAX reference
    ref = alpha * a + (1.0 - alpha) * b
    assert m.shape == a.shape and m.dtype == a.dtype
    assert jnp.allclose(m, ref, atol=1e-6, rtol=1e-6)

    print("KERNEL_OK")
</pallas_src>

<mosaic_0001>
module attributes {stable_mosaic.version = 11 : i64} {
  func.func @_mixup_kernel(%arg0: i32, %arg1: memref<1xf32, #tpu.memory_space<smem>>, %arg2: memref<8x128xf32, #tpu.memory_space<vmem>>, %arg3: memref<8x128xf32, #tpu.memory_space<vmem>>, %arg4: memref<8x128xf32, #tpu.memory_space<vmem>>) attributes {dimension_semantics = [#tpu.dimension_semantics<parallel>], iteration_bounds = array<i64: 2>, scalar_prefetch = 0 : i64, scratch_operands = 0 : i64, tpu.core_type = #tpu.core_type<tc>, window_params = [{transform_indices = @transform_0, window_bounds = array<i64: 1>}, {transform_indices = @transform_1, window_bounds = array<i64: 8, 128>}, {transform_indices = @transform_2, window_bounds = array<i64: 8, 128>}, {transform_indices = @transform_3, window_bounds = array<i64: 8, 128>}]} {
    %c0 = arith.constant 0 : index
    %c0_0 = arith.constant 0 : index
    %0 = vector.load %arg2[%c0, %c0_0] : memref<8x128xf32, #tpu.memory_space<vmem>>, vector<8x128xf32>
    %c0_1 = arith.constant 0 : index
    %c0_2 = arith.constant 0 : index
    %1 = vector.load %arg3[%c0_1, %c0_2] : memref<8x128xf32, #tpu.memory_space<vmem>>, vector<8x128xf32>
    %c0_3 = arith.constant 0 : index
    %2 = memref.load %arg1[%c0_3] : memref<1xf32, #tpu.memory_space<smem>>
    %3 = arith.subf %0, %1 : vector<8x128xf32>
    %4 = vector.broadcast %2 : f32 to vector<8x128xf32>
    %5 = arith.mulf %4, %3 : vector<8x128xf32>
    %6 = arith.addf %1, %5 : vector<8x128xf32>
    %c0_4 = arith.constant 0 : index
    %c0_5 = arith.constant 0 : index
    %7 = vector.load %arg4[%c0_4, %c0_5] : memref<8x128xf32, #tpu.memory_space<vmem>>, vector<8x128xf32>
    tpu.vector_store %arg4[%c0_4, %c0_5], %6 {strides = array<i32>} : memref<8x128xf32, #tpu.memory_space<vmem>>, vector<8x128xf32>,
    return
  }
  func.func @transform_0(%arg0: i32) -> i32 {
    %c0_i32 = arith.constant 0 : i32
    %c0_i32_0 = arith.constant 0 : i32
    return %c0_i32 : i32
  }
  func.func @transform_1(%arg0: i32) -> (i32, i32) {
    %c0_i32 = arith.constant 0 : i32
    %c0_i32_0 = arith.constant 0 : i32
    return %arg0, %c0_i32 : i32, i32
  }
  func.func @transform_2(%arg0: i32) -> (i32, i32) {
    %c0_i32 = arith.constant 0 : i32
    %c0_i32_0 = arith.constant 0 : i32
    return %arg0, %c0_i32 : i32, i32
  }
  func.func @transform_3(%arg0: i32) -> (i32, i32) {
    %c0_i32 = arith.constant 0 : i32
    %c0_i32_0 = arith.constant 0 : i32
    return %arg0, %c0_i32 : i32, i32
  }
}

</mosaic_0001>

<bundles_post_ra>
// kernel: tpu_custom_call.1
= control target key start
LH: loop header
LB: loop body
LE: loop exit
PB: predicated region body
PF: predicated region fallthrough
CT: control target
= control target key end

     0   :  { %s751_s0 = inlined_call_operand.<no memory space> [shape: f32[1], index: 0, kind: input, shape index: {}]   ;;  %s752_s1 = inlined_call_operand.hbm [shape: f32[16,128], index: 1, kind: input, shape index: {}]   ;;  %s753_s2 = inlined_call_operand.hbm [shape: f32[16,128], index: 2, kind: input, shape index: {}]   ;;  %s754_s3 = inlined_call_operand.hbm [shape: f32[16,128], index: 3, kind: output, shape index: {}]  }
   0x1   :  { %8 = sst [smem:[#allocation2]] %s751_s0 }
   0x2   :  { %9 = vsyncpa [#allocation4], 0 }
   0x3   :  { %11 = vsyncpa [#allocation4 + $0x1], 0 }
   0x4   :  { %12 = vsyncpa [#allocation7], 0 }
   0x5   :  { %14 = vsyncpa [#allocation7 + $0x1], 0 }
   0x6   :  { %15 = vsyncpa [#allocation5], 0 }
   0x7   :  { %17 = vsyncpa [#allocation5 + $0x1], 0  ;;  %s557_s14 = smov 0   ;;  %s559_s15 = smov 0  }
   0x8   :  { %s561_s16 = smov 0   ;;  %s563_s17 = smov 0  }
   0x9 LB: > { %s578_s0 = sadd.s32 4294967295, %s529_s17   ;;  %s339_s18 = sadd.s32 4294967294, %s529_s17   ;;  %s529_s17 = sphi %s563_s17, %s773_s17   ;;  %s525_s16 = sphi %s561_s16, %s772_s16   ;;  %s521_s15 = sphi %s559_s15, %s771_s15   ;;  %s517_s14 = sphi %s557_s14, %s770_s14  }
   0xa   : > { %s582_s19 = sadd.s32 1, %s529_s17   ;;  %s51_s20 = sadd.s32 1, %s525_s16 }
   0xb   : > { %s48_s21 = ssub.s32 %s529_s17, %s582_s19  ;;  %p58_p0 = scmp.ne.s32.totalorder %s525_s16, %s521_s15 }
   0xc   : > { %p49_p1 = scmp.eq.s32.totalorder %s48_s21, 0  ;;  %p59_p2 = scmp.eq.s32.totalorder %s529_s17, 0 }
   0xd   : > { %p64_p3 = scmp.ne.s32.totalorder %s521_s15, %s517_s14  ;;  %p65_p4 = scmp.eq.s32.totalorder %s578_s0, 0 }
   0xe   : > { %s594_s22 = scalar_select %p49_p1, %s525_s16, %s51_s20  }
   0xf   : > { %p596_p5 = por %p59_p2, %p58_p0  ;;  %p600_p6 = por %p65_p4, %p64_p3 }
  0x10   : > { %p114_p7 = scmp.eq.s32.totalorder %s578_s0, 1  ;;  %p120_p8 = scmp.eq.s32.totalorder %s339_s18, 1 }
  0x11   : > { %s758_s24 = scalar_select %p600_p6, 1, 0 }
  0x12   : > { %p371_p10 = scmp.lt.s32.totalorder %s529_s17, 2  ;;  %p607_p11 = por %p114_p7, %p58_p0 }
  0x13   : > { %p611_p12 = por %p120_p8, %p64_p3  ;;  %s616_s27 = sand.u32 1, %s525_s16  }
  0x14   : > { %s759_s25 = scalar_select %p607_p11, 1, 0 }
  0x15   : > { %s760_s26 = scalar_select %p611_p12, 1, 0 }
  0x16   : > { %s343_s28 = sshll.u32 %s529_s17, 7  ;;  %s342_s29 = sshll.u32 %s616_s27, 3 }
  0x17   : > { %s625_s5 = scalar_lea.hbm %s752_s1, %s343_s28  ;;  %s147_s6 = scalar_lea.vmem [#allocation3], %s342_s29 }
  0x18   : > { %s154_s7 = sshll.u32 %s147_s6, 4  ;;  %p631_p13 = pnand %p371_p10, %p596_p5  ;;  %s635_s7 = int_to_ptr.vmem [resolvable:$true] %s154_s7 }
  0x19   : > { %s144_s9 = scalar_lea.sflag [#allocation4], %s616_s27  ;;  %s405_s10 = scalar_lea.hbm %s625_s5, 128 }
  0x1a   : > { %p406_p2 = scmp.ne.s32.totalorder %s625_s5, %s405_s10  ;;  %p407_p3 = pneg %p631_p13 }
  0x1b   : > { %s410_s13 = scalar_lea.hbm %s752_s1, 256  ;;  %p411_p5 = scmp.lt.s32.totalorder %s625_s5, %s752_s1 }
  0x1c   : > { %p408_p4 = pnand %p407_p3, %p406_p2  ;;  %p412_p8 = scmp.lt.s32.totalorder %s410_s13, %s405_s10 }
  0x1e   : > { %p409_p7 = pneg %p408_p4  ;;  %p413_p10 = por %p412_p8, %p411_p5 }
  0x20   : > { %p414_p9 = pnand %p413_p10, %p409_p7 }
  0x22   : > { %417 = shalt.err (!%p414_p9)
}
  0x23   : > { %s418_s21 = scalar_lea.vmem %s635_s7, 128  ;;  %s531_s23 = smov [#allocation3]  }
  0x24   : > { %p419_p0 = scmp.ne.s32.totalorder %s635_s7, %s418_s21  ;;  %s423_s30 = sshll.u32 %s531_s23, 4  ;;  %s424_s30 = int_to_ptr.vmem [resolvable:$false] %s423_s30 }
  0x25   : > { %s425_s4 = scalar_lea.vmem %s424_s30, 256  ;;  %p426_p1 = scmp.lt.s32.totalorder %s635_s7, %s424_s30 }
  0x26   : > { %p421_p2 = pnand %p419_p0, %p407_p3  ;;  %p427_p12 = scmp.lt.s32.totalorder %s425_s4, %s418_s21 }
  0x28   : > { %p422_p4 = pneg %p421_p2  ;;  %p428_p11 = por %p427_p12, %p426_p1 }
  0x2a   : > { %p429_p5 = pnand %p428_p11, %p422_p4 }
  0x2c   : > { %432 = shalt.err (!%p429_p5)
}
  0x2d   : > { %363 = dma.hbm_to_vmem [thread:$0]  (!%p631_p13), %s625_s5, 128, %s635_s7, %s144_s9  }
  0x2e   : > { %p762_p9 = scmp.lt.s32.totalorder %s529_s17, 3  ;;  %p763_p0 = scmp.ge.s32.totalorder %s529_s17, 1 }
  0x2f   : > { %s677_s12 = scalar_lea.hbm %s753_s2, %s343_s28  ;;  %s165_s13 = scalar_lea.vmem [#allocation6], %s342_s29 }
  0x30   : > { %p668_p7 = pnand %p763_p0, %p762_p9  ;;  %s172_s18 = sshll.u32 %s165_s13, 4  ;;  %s173_s18 = int_to_ptr.vmem [resolvable:$true] %s172_s18 }
  0x31   : > { %s162_s5 = scalar_lea.sflag [#allocation7], %s616_s27  ;;  %s433_s7 = scalar_lea.hbm %s677_s12, 128 }
  0x32   : > { %s764_s6 = scalar_select %p668_p7, 1, 0 }
  0x33   : > { %p434_p11 = scmp.ne.s32.totalorder %s677_s12, %s433_s7  ;;  %s438_s21 = scalar_lea.hbm %s753_s2, 256 }
  0x34   : > { %p439_p8 = scmp.lt.s32.totalorder %s677_s12, %s753_s2  ;;  %p440_p10 = scmp.lt.s32.totalorder %s438_s21, %s433_s7 }
  0x35   : > { %p436_p12 = pnand %p434_p11, %p407_p3 }
  0x36   : > { %p441_p2 = por %p440_p10, %p439_p8 }
  0x37   : > { %p437_p1 = pneg %p436_p12 }
  0x39   : > { %p442_p4 = pnand %p441_p2, %p437_p1 }
  0x3b   : > { %445 = shalt.err (!%p442_p4)
}
  0x3c   : > { %s446_s29 = scalar_lea.vmem %s173_s18, 128  ;;  %s532_s27 = smov [#allocation6]  }
  0x3d   : > { %p447_p5 = scmp.ne.s32.totalorder %s173_s18, %s446_s29  ;;  %s451_s30 = sshll.u32 %s532_s27, 4  ;;  %s452_s30 = int_to_ptr.vmem [resolvable:$false] %s451_s30 }
  0x3e   : > { %s453_s4 = scalar_lea.vmem %s452_s30, 256  ;;  %p454_p11 = scmp.lt.s32.totalorder %s173_s18, %s452_s30 }
  0x3f   : > { %p449_p9 = pnand %p447_p5, %p407_p3  ;;  %p455_p12 = scmp.lt.s32.totalorder %s453_s4, %s446_s29 }
  0x41   : > { %p450_p0 = pneg %p449_p9  ;;  %p456_p6 = por %p455_p12, %p454_p11 }
  0x43   : > { %p457_p7 = pnand %p456_p6, %p450_p0 }
  0x45   : > { %460 = shalt.err (!%p457_p7)
}
  0x46   : > { %366 = dma.hbm_to_vmem [thread:$0]  (!%p631_p13), %s677_s12, 128, %s173_s18, %s162_s5  }
  0x47   : > { %p765_p1 = scmp.ne.s32.totalorder %s764_s6, 0 }
  0x48   : > { %s703_s10 = sand.u32 (!%p765_p1), 1, %s521_s15   ;;  %p766_p3 = scmp.ne.s32.totalorder (!%p765_p1), %s758_s24, 0 }
  0x49   : > { %181 = sbr.rel (%p765_p1) target bundleno = 106 (0x6a), region = 32  ;;  %s347_s11 = sshll.u32 (!%p765_p1), %s703_s10, 3 }
  0x4a   : > { %s184_s13 = scalar_lea.sflag (!%p765_p1), [#allocation4], %s703_s10  ;;  %s187_s7 = scalar_lea.vmem (!%p765_p1), [#allocation3], %s347_s11 }
  0x4e   : > { %504 = dma.done.wait (%p766_p3), %s184_s13, 128  }
  0x4f   : > { %506 = vsyncadd (%p766_p3), %s184_s13, 4294967168  ;;  %s193_s8 = scalar_lea.sflag [#allocation7], %s703_s10  ;;  %s196_s12 = scalar_lea.vmem [#allocation6], %s347_s11 }
  0x50   : > { %508 = dma.done.wait (%p766_p3), %s193_s8, 128  }
  0x51   : > { %510 = vsyncadd (%p766_p3), %s193_s8, 4294967168  ;;  %s226_s6 = sld [smem:[#allocation2]]  ;;  %v224_v0 = vld [vmem:[%s187_s7] sm:$0xff]  ;;  %v225_v1 = vld [vmem:[%s196_s12] sm:$0xff]  ;;  %s223_s18 = scalar_lea.vmem [#allocation8], %s347_s11 }
  0x52   : > { %v227_v3 = vsub.f32 %v224_v0, %v225_v1  ;;  %s246_s5 = sshll.u32 %s223_s18, 4  ;;  %s351_s9 = sshll.u32 %s578_s0, 7  ;;  %s247_s5 = int_to_ptr.vmem [resolvable:$true] %s246_s5 }
  0x53   : > { %s244_s28 = scalar_lea.hbm %s754_s3, %s351_s9  ;;  %s233_s24 = scalar_lea.sflag [#allocation5], %s703_s10 }
  0x54   : > { %s461_s23 = scalar_lea.vmem %s247_s5, 128  ;;  %p767_p13 = scmp.ne.s32.totalorder %s759_s25, 0 }
  0x55   : > { %p462_p6 = scmp.ne.s32.totalorder %s247_s5, %s461_s23  ;;  %s533_s29 = smov [#allocation8]  }
  0x56   : > { %s465_s27 = sshll.u32 %s533_s29, 4  ;;  %s466_s27 = int_to_ptr.vmem [resolvable:$false] %s465_s27 }
  0x57   : > { %v228_v2 = vstv %s226_s6  ;;  %p463_p7 = pnand %p462_p6, %p767_p13  ;;  %s467_s30 = scalar_lea.vmem %s466_s27, 256 }
  0x58   : > { %v229_v4 = vmul.f32 %v228_v2, %v227_v3  ;;  %p468_p10 = scmp.lt.s32.totalorder %s247_s5, %s466_s27  ;;  %p469_p2 = scmp.lt.s32.totalorder %s467_s30, %s461_s23 }
  0x59   : > { %p464_p8 = pneg %p463_p7 }
  0x5a   : > { %v230_v5 = vadd.f32 %v229_v4, %v225_v1  ;;  %p470_p4 = por %p469_p2, %p468_p10 }
  0x5c   : > { %231 = vst [vmem:[%s223_s18] sm:$0xff] %v230_v5  ;;  %p471_p5 = pnand %p470_p4, %p464_p8 }
  0x5e   : > { %474 = shalt.err (!%p471_p5)
}
  0x5f   : > { %s475_s0 = scalar_lea.hbm %s244_s28, 128  ;;  %s479_s11 = scalar_lea.hbm %s754_s3, 256 }
  0x60   : > { %p476_p9 = scmp.ne.s32.totalorder %s244_s28, %s475_s0  ;;  %p480_p12 = scmp.lt.s32.totalorder %s244_s28, %s754_s3 }
  0x61   : > { %p481_p1 = scmp.lt.s32.totalorder %s479_s11, %s475_s0 }
  0x62   : > { %p477_p0 = pnand %p476_p9, %p767_p13 }
  0x63   : > { %p482_p3 = por %p481_p1, %p480_p12 }
  0x64   : > { %p478_p11 = pneg %p477_p0 }
  0x66   : > { %p483_p6 = pnand %p482_p3, %p478_p11 }
  0x68   : > { %486 = shalt.err (!%p483_p6)
}
  0x69   : > { %358 = dma.vmem_to_hbm [thread:$0]  (%p767_p13), %s247_s5, 128, %s244_s28, %s233_s24  }
  0x6a PF: > { %s258_s8 = sand.u32 1, %s517_s14   ;;  %p768_p7 = scmp.ne.s32.totalorder %s760_s26, 0 }
  0x6b   : > { %p769_p8 = scmp.ge.s32.totalorder %s529_s17, 2  ;;  %s259_s12 = scalar_lea.sflag [#allocation5], %s258_s8 }
  0x6d   : > { %p368_p10 = pnand %p769_p8, %p768_p7 }
  0x6f   : > { %p369_p2 = pneg %p368_p10 }
  0x71   : > { %512 = dma.done.wait (%p369_p2), %s259_s12, 128  }
  0x72   : > { %514 = vsyncadd (%p369_p2), %s259_s12, 4294967168  ;;  %p20_p4 = scmp.ge.s32.totalorder %s582_s19, 4   ;;  %s770_s14 = smov %s521_s15 }
  0x73   : > { %s771_s15 = smov %s525_s16  ;;  %s772_s16 = smov %s594_s22 }
  0x74   : > { %s773_s17 = smov %s582_s19  ;;  %22 = sbr.rel (!%p20_p4) target bundleno = 9 (0x9), region = 90 }
  0x79   :  { %264 = vsyncpa [#allocation4], 1 }
  0x7a   :  { %266 = vsyncpa [#allocation4 + $0x1], 1 }
  0x7b   :  { %267 = vsyncpa [#allocation7], 1 }
  0x7c   :  { %269 = vsyncpa [#allocation7 + $0x1], 1 }
  0x7d   :  { %270 = vsyncpa [#allocation5], 1 }
  0x7e   :  { %272 = vsyncpa [#allocation5 + $0x1], 1 }

</bundles_post_ra>
